<compile_context>
chip_gen: v7x
topology: tpu7x:2x2x1
jax: 0.10.0
libtpu: 0.0.40
codegen_flags: <defaults>
</compile_context>

<pallas_src>
from functools import partial

import jax
import jax.numpy as jnp
from jax.experimental import pallas as pl
from jax.experimental.pallas import tpu as pltpu


def _round_up(x, m):
    return ((x + m - 1) // m) * m


def _mlp_fused_kernel(x_ref, w1_ref, w2_ref, wh_ref, b_ref, out_ref,
                      *, h1_size, h2_size):
    # Packed biases: [b1 (h1_size) | b2 (h2_size) | fused head bias (128-pad)]
    b1 = b_ref[:, :h1_size]                              # [1, 256]
    b2 = b_ref[:, h1_size:h1_size + h2_size]             # [1, 128]
    bh = b_ref[:, h1_size + h2_size:]                    # [1, head_pad]

    x = x_ref[...]                                       # [TB, D_in]
    h1 = jnp.maximum(
        jnp.dot(x, w1_ref[...], preferred_element_type=jnp.float32) + b1, 0.0)
    h2 = jnp.maximum(
        jnp.dot(h1, w2_ref[...], preferred_element_type=jnp.float32) + b2, 0.0)

    # Fused policy+value head: single lane-dense [TB, head_pad] output.
    out_ref[...] = (
        jnp.dot(h2, wh_ref[...], preferred_element_type=jnp.float32) + bh
    ).astype(out_ref.dtype)


def pack_params(params, compute_dtype=jnp.float32):
    """One-time parameter packing, hoisted out of the per-call forward path.

    Fuses the policy and value head weights/biases into a single lane-dense
    (128-padded) matrix and concatenates all biases into one array, so the
    forward pass issues exactly 4 parameter DMAs with no per-call XLA
    concat/pad ops.
    """
    H1 = params["w1"].shape[1]          # 256
    H2 = params["w2"].shape[1]          # 128
    num_outputs = params["wp"].shape[1]

    head_pad = max(128, _round_up(num_outputs + 1, 128))
    pad = head_pad - (num_outputs + 1)
    head_w = jnp.pad(jnp.concatenate([params["wp"], params["wv"]], axis=1),
                     ((0, 0), (0, pad)))                  # [H2, head_pad]
    head_b = jnp.pad(jnp.concatenate([params["bp"], params["bv"]], axis=1),
                     ((0, 0), (0, pad)))                  # [1,  head_pad]
    biases = jnp.concatenate([params["b1"], params["b2"], head_b], axis=1)

    return dict(
        w1=params["w1"].astype(compute_dtype),
        w2=params["w2"].astype(compute_dtype),
        head_w=head_w.astype(compute_dtype),
        biases=biases.astype(jnp.float32),               # biases stay f32
        num_outputs=num_outputs, H1=H1, H2=H2, head_pad=head_pad,
        compute_dtype=compute_dtype)


def custom_model_forward(x, packed):
    """Runs the fused MLP kernel.

    Args:
      x: [B, input_size] float32 observations (already flattened).
      packed: output of pack_params().

    Returns:
      (policy_out [B, num_outputs], value_out [B])
    """
    B, input_size = x.shape
    H1, H2 = packed["H1"], packed["H2"]
    head_pad = packed["head_pad"]
    num_outputs = packed["num_outputs"]
    bias_w = H1 + H2 + head_pad
    compute_dtype = packed["compute_dtype"]
    x = x.astype(compute_dtype)

    # --- Batch tiling -------------------------------------------------------
    # Large tile (<=1024 rows) to amortize the ~0.35us per-grid-step pipeline
    # overhead.  No row padding: grid is ceil-div and Pallas handles the
    # ragged last block.  This is safe because the MLP is strictly
    # row-independent (no cross-batch reductions inside the kernel); OOB rows
    # of the output block are discarded by Pallas.
    TB = min(1024, _round_up(B, 8))
    n_tiles = pl.cdiv(B, TB)
    # v7x load balance: the "parallel" batch axis is sharded across 2
    # TensorCores -- prefer an even tile count when there is >1 tile.
    if n_tiles > 1 and n_tiles % 2 == 1:
        TB = _round_up(pl.cdiv(B, n_tiles + 1), 8)
        n_tiles = pl.cdiv(B, TB)
    grid = (n_tiles,)

    # --- Explicit VMEM budget -----------------------------------------------
    itemsize = jnp.dtype(compute_dtype).itemsize
    vmem_needed = (
        2 * TB * input_size * itemsize                      # x tile, dbl-buf
        + 2 * TB * head_pad * 4                             # out tile, dbl-buf
        + (input_size * H1 + H1 * H2 + H2 * head_pad) * itemsize  # weights
        + bias_w * 4                                        # packed biases
        + TB * (H1 + H2) * 4)                               # h1/h2 staging
    vmem_limit = max(32 << 20, min(64 << 20, 2 * vmem_needed + (4 << 20)))

    head_out = pl.pallas_call(
        partial(_mlp_fused_kernel, h1_size=H1, h2_size=H2),
        grid=grid,
        in_specs=[
            pl.BlockSpec((TB, input_size), lambda i: (i, 0)),   # x: tiled on B
            pl.BlockSpec((input_size, H1), lambda i: (0, 0)),   # w1: resident
            pl.BlockSpec((H1, H2),         lambda i: (0, 0)),   # w2: resident
            pl.BlockSpec((H2, head_pad),   lambda i: (0, 0)),   # fused head W
            pl.BlockSpec((1, bias_w),      lambda i: (0, 0)),   # packed biases
        ],
        out_specs=pl.BlockSpec((TB, head_pad), lambda i: (i, 0)),
        out_shape=jax.ShapeDtypeStruct((B, head_pad), jnp.float32),
        compiler_params=pltpu.CompilerParams(
            dimension_semantics=("parallel",),
            vmem_limit_bytes=vmem_limit),
    )(x, packed["w1"], packed["w2"], packed["head_w"], packed["biases"])

    policy_out = head_out[:, :num_outputs]
    value_out = head_out[:, num_outputs]      # .squeeze(1) equivalent
    return policy_out, value_out


def init_params(key, input_size, hidden1, hidden2, num_outputs):
    """Deterministic synthetic parameters (PyTorch-style uniform fan-in init)."""
    ks = jax.random.split(key, 8)

    def linear(kw, kb, fan_in, fan_out):
        bound = 1.0 / jnp.sqrt(jnp.float32(fan_in))
        w = jax.random.uniform(kw, (fan_in, fan_out), jnp.float32, -bound, bound)
        b = jax.random.uniform(kb, (1, fan_out), jnp.float32, -bound, bound)
        return w, b

    w1, b1 = linear(ks[0], ks[1], input_size, hidden1)
    w2, b2 = linear(ks[2], ks[3], hidden1, hidden2)
    wp, bp = linear(ks[4], ks[5], hidden2, num_outputs)
    wv, bv = linear(ks[6], ks[7], hidden2, 1)
    return dict(w1=w1, b1=b1, w2=w2, b2=b2, wp=wp, bp=bp, wv=wv, bv=bv)


if __name__ == "__main__":
    key = jax.random.PRNGKey(0)
    k_obs, k_params = jax.random.split(key)

    # Small shapes consistent with the module: obs_space flattened to 64,
    # hidden sizes fixed at 256/128 by the module, 8 discrete actions.
    batch = 8
    input_size = 64          # int(np.product(obs_space.shape))
    hidden1, hidden2 = 256, 128
    num_outputs = 8

    obs_flat = jax.random.normal(k_obs, (batch, input_size), jnp.float32)
    params = init_params(k_params, input_size, hidden1, hidden2, num_outputs)

    # Pack once (hoisted out of the forward path); f32 for strict check.
    # For serving: pack_params(params, compute_dtype=jnp.bfloat16).
    packed = pack_params(params, compute_dtype=jnp.float32)

    policy_out, value_out = custom_model_forward(obs_flat, packed)
    jax.block_until_ready((policy_out, value_out))

    # Pure-JAX reference check (same math, no Pallas).
    h1 = jnp.maximum(obs_flat @ params["w1"] + params["b1"], 0.0)
    h2 = jnp.maximum(h1 @ params["w2"] + params["b2"], 0.0)
    ref_policy = h2 @ params["wp"] + params["bp"]
    ref_value = (h2 @ params["wv"] + params["bv"])[:, 0]
    assert policy_out.shape == (batch, num_outputs)
    assert value_out.shape == (batch,)
    assert jnp.allclose(policy_out, ref_policy, atol=1e-5, rtol=1e-5)
    assert jnp.allclose(value_out, ref_value, atol=1e-5, rtol=1e-5)

    print("KERNEL_OK")
</pallas_src>

<mosaic_0001>
module attributes {stable_mosaic.version = 11 : i64} {
  func.func @_mlp_fused_kernel(%arg0: i32, %arg1: memref<8x64xf32, #tpu.memory_space<vmem>>, %arg2: memref<64x256xf32, #tpu.memory_space<vmem>>, %arg3: memref<256x128xf32, #tpu.memory_space<vmem>>, %arg4: memref<128x128xf32, #tpu.memory_space<vmem>>, %arg5: memref<1x512xf32, #tpu.memory_space<vmem>>, %arg6: memref<8x128xf32, #tpu.memory_space<vmem>>) attributes {dimension_semantics = [#tpu.dimension_semantics<parallel>], iteration_bounds = array<i64: 1>, scalar_prefetch = 0 : i64, scratch_operands = 0 : i64, tpu.core_type = #tpu.core_type<tc>, window_params = [{transform_indices = @transform_0, window_bounds = array<i64: 8, 64>}, {pipeline_mode = #tpu.pipeline_mode<synchronous>, transform_indices = @transform_1, window_bounds = array<i64: 64, 256>}, {pipeline_mode = #tpu.pipeline_mode<synchronous>, transform_indices = @transform_2, window_bounds = array<i64: 256, 128>}, {pipeline_mode = #tpu.pipeline_mode<synchronous>, transform_indices = @transform_3, window_bounds = array<i64: 128, 128>}, {pipeline_mode = #tpu.pipeline_mode<synchronous>, transform_indices = @transform_4, window_bounds = array<i64: 1, 512>}, {transform_indices = @transform_5, window_bounds = array<i64: 8, 128>}]} {
    %c0 = arith.constant 0 : index
    %c0_0 = arith.constant 0 : index
    %0 = vector.load %arg5[%c0, %c0_0] : memref<1x512xf32, #tpu.memory_space<vmem>>, vector<1x256xf32>
    %c0_1 = arith.constant 0 : index
    %c256 = arith.constant 256 : index
    %1 = vector.load %arg5[%c0_1, %c256] : memref<1x512xf32, #tpu.memory_space<vmem>>, vector<1x128xf32>
    %c0_2 = arith.constant 0 : index
    %c384 = arith.constant 384 : index
    %2 = vector.load %arg5[%c0_2, %c384] : memref<1x512xf32, #tpu.memory_space<vmem>>, vector<1x128xf32>
    %c0_3 = arith.constant 0 : index
    %c0_4 = arith.constant 0 : index
    %3 = vector.load %arg1[%c0_3, %c0_4] : memref<8x64xf32, #tpu.memory_space<vmem>>, vector<8x64xf32>
    %c0_5 = arith.constant 0 : index
    %c0_6 = arith.constant 0 : index
    %4 = vector.load %arg2[%c0_5, %c0_6] : memref<64x256xf32, #tpu.memory_space<vmem>>, vector<64x256xf32>
    %cst = arith.constant dense<0.000000e+00> : vector<8x256xf32>
    %5 = tpu.matmul %3, %4, %cst {dimension_numbers = #tpu.dot_dimension_numbers<[1], [0], [0], [1], [0, 0, 1, 1], [], []>} : vector<8x64xf32>, vector<64x256xf32>, vector<8x256xf32> -> vector<8x256xf32>
    %6 = vector.broadcast %0 : vector<1x256xf32> to vector<8x256xf32>
    %7 = arith.addf %5, %6 : vector<8x256xf32>
    %cst_7 = arith.constant 0.000000e+00 : f32
    %8 = vector.broadcast %cst_7 : f32 to vector<8x256xf32>
    %9 = arith.maximumf %7, %8 : vector<8x256xf32>
    %c0_8 = arith.constant 0 : index
    %c0_9 = arith.constant 0 : index
    %10 = vector.load %arg3[%c0_8, %c0_9] : memref<256x128xf32, #tpu.memory_space<vmem>>, vector<256x128xf32>
    %cst_10 = arith.constant dense<0.000000e+00> : vector<8x128xf32>
    %11 = tpu.matmul %9, %10, %cst_10 {dimension_numbers = #tpu.dot_dimension_numbers<[1], [0], [0], [1], [0, 0, 1, 1], [], []>} : vector<8x256xf32>, vector<256x128xf32>, vector<8x128xf32> -> vector<8x128xf32>
    %12 = vector.broadcast %1 : vector<1x128xf32> to vector<8x128xf32>
    %13 = arith.addf %11, %12 : vector<8x128xf32>
    %cst_11 = arith.constant 0.000000e+00 : f32
    %14 = vector.broadcast %cst_11 : f32 to vector<8x128xf32>
    %15 = arith.maximumf %13, %14 : vector<8x128xf32>
    %c0_12 = arith.constant 0 : index
    %c0_13 = arith.constant 0 : index
    %16 = vector.load %arg4[%c0_12, %c0_13] : memref<128x128xf32, #tpu.memory_space<vmem>>, vector<128x128xf32>
    %cst_14 = arith.constant dense<0.000000e+00> : vector<8x128xf32>
    %17 = tpu.matmul %15, %16, %cst_14 {dimension_numbers = #tpu.dot_dimension_numbers<[1], [0], [0], [1], [0, 0, 1, 1], [], []>} : vector<8x128xf32>, vector<128x128xf32>, vector<8x128xf32> -> vector<8x128xf32>
    %18 = vector.broadcast %2 : vector<1x128xf32> to vector<8x128xf32>
    %19 = arith.addf %17, %18 : vector<8x128xf32>
    %c0_15 = arith.constant 0 : index
    %c0_16 = arith.constant 0 : index
    %20 = vector.load %arg6[%c0_15, %c0_16] : memref<8x128xf32, #tpu.memory_space<vmem>>, vector<8x128xf32>
    tpu.vector_store %arg6[%c0_15, %c0_16], %19 {strides = array<i32>} : memref<8x128xf32, #tpu.memory_space<vmem>>, vector<8x128xf32>,
    return
  }
  func.func @transform_0(%arg0: i32) -> (i32, i32) {
    %c0_i32 = arith.constant 0 : i32
    %c0_i32_0 = arith.constant 0 : i32
    return %arg0, %c0_i32 : i32, i32
  }
  func.func @transform_1(%arg0: i32) -> (i32, i32) {
    %c0_i32 = arith.constant 0 : i32
    %c0_i32_0 = arith.constant 0 : i32
    %c0_i32_1 = arith.constant 0 : i32
    return %c0_i32, %c0_i32_0 : i32, i32
  }
  func.func @transform_2(%arg0: i32) -> (i32, i32) {
    %c0_i32 = arith.constant 0 : i32
    %c0_i32_0 = arith.constant 0 : i32
    %c0_i32_1 = arith.constant 0 : i32
    return %c0_i32, %c0_i32_0 : i32, i32
  }
  func.func @transform_3(%arg0: i32) -> (i32, i32) {
    %c0_i32 = arith.constant 0 : i32
    %c0_i32_0 = arith.constant 0 : i32
    %c0_i32_1 = arith.constant 0 : i32
    return %c0_i32, %c0_i32_0 : i32, i32
  }
  func.func @transform_4(%arg0: i32) -> (i32, i32) {
    %c0_i32 = arith.constant 0 : i32
    %c0_i32_0 = arith.constant 0 : i32
    %c0_i32_1 = arith.constant 0 : i32
    return %c0_i32, %c0_i32_0 : i32, i32
  }
  func.func @transform_5(%arg0: i32) -> (i32, i32) {
    %c0_i32 = arith.constant 0 : i32
    %c0_i32_0 = arith.constant 0 : i32
    return %arg0, %c0_i32 : i32, i32
  }
}

</mosaic_0001>

<bundles_post_ra>
// kernel: tpu_custom_call.1
= control target key start
LH: loop header
LB: loop body
LE: loop exit
PB: predicated region body
PF: predicated region fallthrough
CT: control target
= control target key end

     0   :  { %10 = vsyncpa [#allocation3], 0  ;;  %s806_s0 = inlined_call_operand.hbm [shape: f32[8,64], index: 0, kind: input, shape index: {}]   ;;  %s807_s1 = inlined_call_operand.hbm [shape: f32[64,256], index: 1, kind: input, shape index: {}]   ;;  %s808_s2 = inlined_call_operand.hbm [shape: f32[256,128], index: 2, kind: input, shape index: {}]   ;;  %s809_s3 = inlined_call_operand.hbm [shape: f32[128,128], index: 3, kind: input, shape index: {}]   ;;  %s810_s4 = inlined_call_operand.vmem [shape: f32[1,512], index: 4, kind: input, shape index: {}]   ;;  %s811_s5 = inlined_call_operand.hbm [shape: f32[8,128], index: 5, kind: output, shape index: {}]  }
   0x1   :  { %11 = vsyncpa [#allocation6], 0 }
   0x2   :  { %12 = vsyncpa [#allocation9], 0 }
   0x3   :  { %13 = vsyncpa [#allocation4], 0  ;;  %s693_s18 = smov [#allocation5]   ;;  %s575_s22 = scalar_lea.hbm %s807_s1, 2048 }
   0x4   :  { %s29_s19 = sshll.u32 %s693_s18, 4  ;;  %p576_p0 = scmp.ne.s32.totalorder %s807_s1, %s575_s22  ;;  %s30_s19 = int_to_ptr.vmem [resolvable:$true] %s29_s19 }
   0x5   :  { %p579_p1 = scmp.lt.u32.totalorder %s575_s22, %s807_s1 }
   0x7   :  { %p581_p2 = pnand %p579_p1, %p576_p0 }
   0x9   :  { %584 = shalt.err (!%p581_p2)
}
   0xa   :  { %s585_s27 = scalar_lea.vmem %s30_s19, 2048  ;;  %p590_p4 = scmp.lt.s32.totalorder %s30_s19, %s30_s19 }
   0xb   :  { %p586_p3 = scmp.ne.s32.totalorder %s30_s19, %s585_s27  ;;  %p591_p5 = scmp.lt.s32.totalorder %s585_s27, %s585_s27 }
   0xd   :  { %p592_p6 = por %p591_p5, %p590_p4 }
   0xf   :  { %p593_p7 = pnand %p592_p6, %p586_p3 }
  0x11   :  { %596 = shalt.err (!%p593_p7)
}
  0x12   :  { %s694_s28 = smov 256   ;;  %s695_s29 = smov 16  }
  0x13   :  { %35 = dma.hbm_to_vmem [thread:$0]  %s807_s1, 2048, %s30_s19, [#allocation6], %s694_s28, %s694_s28, %s695_s29  }
  0x14   :  { %s696_s7 = smov [#allocation2]   ;;  %s697_s9 = smov [#allocation7]  }
  0x15   :  { %s20_s8 = sshll.u32 %s696_s7, 4  ;;  %s41_s10 = sshll.u32 %s697_s9, 4  ;;  %s21_s8 = int_to_ptr.vmem [resolvable:$true] %s20_s8  ;;  %s42_s10 = int_to_ptr.vmem [resolvable:$true] %s41_s10 }
  0x16   :  { %s597_s13 = scalar_lea.hbm %s806_s0, 128 }
  0x17   :  { %p598_p8 = scmp.ne.s32.totalorder %s806_s0, %s597_s13  ;;  %p601_p9 = scmp.lt.u32.totalorder %s597_s13, %s806_s0 }
  0x19   :  { %p603_p10 = pnand %p601_p9, %p598_p8 }
  0x1b   :  { %606 = shalt.err (!%p603_p10)
}
  0x1c   :  { %s607_s1 = scalar_lea.vmem %s21_s8, 128  ;;  %p612_p12 = scmp.lt.s32.totalorder %s21_s8, %s21_s8 }
  0x1d   :  { %p608_p11 = scmp.ne.s32.totalorder %s21_s8, %s607_s1  ;;  %p613_p13 = scmp.lt.s32.totalorder %s607_s1, %s607_s1 }
  0x1f   :  { %p614_p0 = por %p613_p13, %p612_p12 }
  0x21   :  { %p615_p1 = pnand %p614_p0, %p608_p11 }
  0x23   :  { %618 = shalt.err (!%p615_p1)
}
  0x24   :  { %23 = dma.hbm_to_vmem [thread:$0]  %s806_s0, 128, %s21_s8, [#allocation3]  }
  0x25   :  { %s619_s22 = scalar_lea.hbm %s808_s2, 4096 }
  0x26   :  { %p620_p2 = scmp.ne.s32.totalorder %s808_s2, %s619_s22  ;;  %p623_p3 = scmp.lt.u32.totalorder %s619_s22, %s808_s2 }
  0x28   :  { %p625_p4 = pnand %p623_p3, %p620_p2 }
  0x2a   :  { %628 = shalt.err (!%p625_p4)
}
  0x2b   :  { %s629_s27 = scalar_lea.vmem %s42_s10, 4096  ;;  %p634_p6 = scmp.lt.s32.totalorder %s42_s10, %s42_s10 }
  0x2c   :  { %p630_p5 = scmp.ne.s32.totalorder %s42_s10, %s629_s27  ;;  %p635_p7 = scmp.lt.s32.totalorder %s629_s27, %s629_s27 }
  0x2e   :  { %p636_p8 = por %p635_p7, %p634_p6 }
  0x30   :  { %p637_p9 = pnand %p636_p8, %p630_p5 }
  0x32   :  { %640 = shalt.err (!%p637_p9)
}
  0x33   :  { %s698_s0 = smov 128   ;;  %s699_s28 = smov 8  }
  0x34   :  { %47 = dma.hbm_to_vmem [thread:$0]  %s808_s2, 4096, %s42_s10, [#allocation6], %s698_s0, %s698_s0, %s699_s28  }
  0x35   :  { %s700_s6 = smov [#allocation8]   ;;  %s641_s11 = scalar_lea.hbm %s809_s3, 2048 }
  0x36   :  { %s53_s7 = sshll.u32 %s700_s6, 4  ;;  %p642_p10 = scmp.ne.s32.totalorder %s809_s3, %s641_s11  ;;  %s54_s7 = int_to_ptr.vmem [resolvable:$true] %s53_s7 }
  0x37   :  { %p645_p11 = scmp.lt.u32.totalorder %s641_s11, %s809_s3 }
  0x39   :  { %p647_p12 = pnand %p645_p11, %p642_p10 }
  0x3b   :  { %650 = shalt.err (!%p647_p12)
}
  0x3c   :  { %s651_s16 = scalar_lea.vmem %s54_s7, 2048  ;;  %p656_p0 = scmp.lt.s32.totalorder %s54_s7, %s54_s7 }
  0x3d   :  { %p652_p13 = scmp.ne.s32.totalorder %s54_s7, %s651_s16  ;;  %p657_p1 = scmp.lt.s32.totalorder %s651_s16, %s651_s16 }
  0x3f   :  { %p658_p2 = por %p657_p1, %p656_p0 }
  0x41   :  { %p659_p3 = pnand %p658_p2, %p652_p13 }
  0x43   :  { %662 = shalt.err (!%p659_p3)
}
  0x44   :  { %59 = dma.hbm_to_vmem [thread:$0]  %s809_s3, 2048, %s54_s7, [#allocation9], %s698_s0, %s698_s0, %s699_s28  }
  0x45   :  { %685 = dma.done.wait [#allocation3], 128  }
  0x46   :  { %686 = vsyncadd [#allocation3], 4294967168 }
  0x47   :  { %687 = dma.done.wait [#allocation6], 6144  }
  0x48   :  { %688 = vsyncadd [#allocation6], 4294961152 }
  0x49   :  { %689 = dma.done.wait [#allocation9], 2048  }
  0x4a   :  { %690 = vsyncadd [#allocation9], 4294965248  ;;  %v701_v0 = vmov 0.0   ;;  %v79_v1 = vld [vmem:[#allocation5 + $0x8] sm:$0xff]  ;;  %v81_v2 = vld [vmem:[#allocation5 + $0x18] sm:$0xff]  ;;  %vm105_vm0 = vcmask 523264  }
  0x4b   :  { %173 = vmatprep.mubr.f32.mxu0 %v701_v0  ;;  %v78_v3 = vld [vmem:[#allocation5] sm:$0xff]  ;;  %v491_v4 = vpack.c.bf16 %v81_v2, %v79_v1  ;;  %v80_v5 = vld [vmem:[#allocation5 + $0x10] sm:$0xff]  ;;  %v83_v6 = vld [vmem:[#allocation5 + $0x28] sm:$0xff]  ;;  %vm703_vm1 = vmmov 0   ;;  %s704_s21 = smov [#allocation10]  }
  0x4c   :  { %v85_v7 = vld [vmem:[#allocation5 + $0x38] sm:$0xff]  ;;  %v493_v8 = vpack.c.bf16 %v80_v5, %v78_v3  ;;  %v82_v10 = vld [vmem:[#allocation5 + $0x20] sm:$0xff]  ;;  %v84_v11 = vld [vmem:[#allocation5 + $0x30] sm:$0xff]  ;;  %s390_s22 = sshll.u32 %s704_s21, 4  ;;  %s391_s22 = int_to_ptr.vmem [resolvable:$true] %s390_s22 }
  0x4d   :  { %v495_v9 = vpack.c.bf16 %v85_v7, %v83_v6  ;;  %v87_v12 = vld [vmem:[#allocation5 + $0x48] sm:$0xff]  ;;  %492 = vmatprep.subr.bf16.mxu0 %v491_v4  ;;  %v89_v13 = vld [vmem:[#allocation5 + $0x58] sm:$0xff]  ;;  %v497_v14 = vpack.c.bf16 %v84_v11, %v82_v10  ;;  %v86_v15 = vld [vmem:[#allocation5 + $0x40] sm:$0xff]  ;;  %s663_s23 = scalar_lea.vmem %s391_s22, 128  ;;  %p668_p5 = scmp.lt.s32.totalorder %s391_s22, %s391_s22 }
  0x4e   :  { %494 = vmatpush1.bf16.msra.mxu0 %v493_v8  ;;  %v88_v16 = vld [vmem:[#allocation5 + $0x50] sm:$0xff]  ;;  %v499_v17 = vpack.c.bf16 %v89_v13, %v87_v12  ;;  %v91_v18 = vld [vmem:[#allocation5 + $0x68] sm:$0xff]  ;;  %v93_v19 = vld [vmem:[#allocation5 + $0x78] sm:$0xff]  ;;  %p664_p4 = scmp.ne.s32.totalorder %s391_s22, %s663_s23  ;;  %p669_p6 = scmp.lt.s32.totalorder %s663_s23, %s663_s23 }
  0x4f   :  { %496 = vmatprep.subr.bf16.mxu0 %v495_v9  ;;  %v198_v20 = vld [vmem:[#allocation7 + $0x80] sm:$0xff]  ;;  %v199_v21 = vld [vmem:[#allocation7 + $0x88] sm:$0xff]  ;;  %v200_v26 = vld [vmem:[#allocation7 + $0x90] sm:$0xff]  ;;  %v501_v29 = vpack.c.bf16 %v88_v16, %v86_v15  ;;  %v503_v34 = vpack.c.bf16 %v93_v19, %v91_v18 }
  0x50   :  { %v182_v22 = vld [vmem:[#allocation7] sm:$0xff]  ;;  %v183_v23 = vld [vmem:[#allocation7 + $0x8] sm:$0xff]  ;;  %v507_v24 = vpack.c.bf16 %v199_v21, %v198_v20  ;;  %v201_v27 = vld [vmem:[#allocation7 + $0x98] sm:$0xff]  ;;  %p670_p7 = por %p669_p6, %p668_p5 }
  0x51   :  { %v509_v25 = vpack.c.bf16 %v183_v23, %v182_v22  ;;  %v184_v28 = vld [vmem:[#allocation7 + $0x10] sm:$0xff]  ;;  %v511_v30 = vpack.c.bf16 %v201_v27, %v200_v26  ;;  %v185_v31 = vld [vmem:[#allocation7 + $0x18] sm:$0xff]  ;;  %v202_v32 = vld [vmem:[#allocation7 + $0xa0] sm:$0xff] }
  0x52   :  { %498 = vmatpush1.bf16.msra.mxu0 %v497_v14  ;;  %v203_v33 = vld [vmem:[#allocation7 + $0xa8] sm:$0xff]  ;;  %v90_v35 = vld [vmem:[#allocation5 + $0x60] sm:$0xff]  ;;  %v92_v36 = vld [vmem:[#allocation5 + $0x70] sm:$0xff]  ;;  %508 = vmatprep.subr.bf16.mxu1 %v507_v24  ;;  %v513_v37 = vpack.c.bf16 %v185_v31, %v184_v28  ;;  %v702_v14 = vmov 0.0|0.0   ;;  %p671_p8 = pnand %p670_p7, %p664_p4 }
  0x53   :  { %500 = vmatprep.subr.bf16.mxu0 %v499_v17  ;;  %510 = vmatpush3.bf16.msra.mxu1 %v509_v25  ;;  %v515_v38 = vpack.c.bf16 %v203_v33, %v202_v32  ;;  %v186_v39 = vld [vmem:[#allocation7 + $0x20] sm:$0xff]  ;;  %v187_v40 = vld [vmem:[#allocation7 + $0x28] sm:$0xff]  ;;  %v505_v41 = vpack.c.bf16 %v92_v36, %v90_v35  ;;  %v204_v42 = vld [vmem:[#allocation7 + $0xb0] sm:$0xff] }
  0x54   :  { %512 = vmatprep.subr.bf16.mxu1 %v511_v30  ;;  %v205_v43 = vld [vmem:[#allocation7 + $0xb8] sm:$0xff]  ;;  %v517_v44 = vpack.c.bf16 %v187_v40, %v186_v39  ;;  %v188_v46 = vld [vmem:[#allocation7 + $0x30] sm:$0xff]  ;;  %v206_v49 = vld [vmem:[#allocation7 + $0xc0] sm:$0xff]  ;;  %v95_v30 = vlaneseq }
  0x55   :  { %v519_v45 = vpack.c.bf16 %v205_v43, %v204_v42  ;;  %v189_v47 = vld [vmem:[#allocation7 + $0x38] sm:$0xff]  ;;  %v207_v50 = vld [vmem:[#allocation7 + $0xc8] sm:$0xff]  ;;  %v190_v53 = vld [vmem:[#allocation7 + $0x40] sm:$0xff] }
  0x56   :  { %502 = vmatpush1.bf16.msra.mxu0 %v501_v29  ;;  %v77_v48 = vld [vmem:[#allocation2] sm:$0xff]  ;;  %v521_v51 = vpack.c.bf16 %v189_v47, %v188_v46  ;;  %v523_v52 = vpack.c.bf16 %v207_v50, %v206_v49  ;;  %v191_v54 = vld [vmem:[#allocation7 + $0x48] sm:$0xff]  ;;  %v208_v55 = vld [vmem:[#allocation7 + $0xd0] sm:$0xff]  ;;  %v96_v31 = vshrl.u32 %v95_v30, 7 }
  0x57   :  { %504 = vmatprep.subr.bf16.mxu0 %v503_v34  ;;  %514 = vmatpush3.bf16.msra.mxu1 %v513_v37  ;;  %v209_v56 = vld [vmem:[#allocation7 + $0xd8] sm:$0xff]  ;;  %v525_v57 = vpack.c.bf16 %v191_v54, %v190_v53  ;;  %v192_v59 = vld [vmem:[#allocation7 + $0x50] sm:$0xff]  ;;  %v210_v61 = vld [vmem:[#allocation7 + $0xe0] sm:$0xff] }
  0x58   :  { %516 = vmatprep.subr.bf16.mxu1 %v515_v38  ;;  %v527_v58 = vpack.c.bf16 %v209_v56, %v208_v55  ;;  %v193_v60 = vld [vmem:[#allocation7 + $0x58] sm:$0xff]  ;;  %v211_v62 = vld [vmem:[#allocation7 + $0xe8] sm:$0xff]  ;;  %v194_v2 = vld [vmem:[#allocation7 + $0x60] sm:$0xff]  ;;  %v97_v32 = vsub.s32 0, %v96_v31  ;;  %v101_v34 = vsub.s32 1, %v96_v31 }
  0x59   :  { %v529_v63 = vpack.c.bf16 %v193_v60, %v192_v59  ;;  %v531_v1 = vpack.c.bf16 %v211_v62, %v210_v61  ;;  %v195_v3 = vld [vmem:[#allocation7 + $0x68] sm:$0xff]  ;;  %v212_v5 = vld [vmem:[#allocation7 + $0xf0] sm:$0xff]  ;;  %v213_v6 = vld [vmem:[#allocation7 + $0xf8] sm:$0xff] }
  0x5a   :  { %506 = vmatpush1.bf16.msra.mxu0 %v505_v41  ;;  %v533_v4 = vpack.c.bf16 %v195_v3, %v194_v2  ;;  %v535_v7 = vpack.c.bf16 %v213_v6, %v212_v5  ;;  %v196_v8 = vld [vmem:[#allocation7 + $0x70] sm:$0xff]  ;;  %v197_v9 = vld [vmem:[#allocation7 + $0x78] sm:$0xff]  ;;  %v291_v11 = vld [vmem:[#allocation8] sm:$0xff] }
  0x5b   :  { %518 = vmatpush3.bf16.msra.mxu1 %v517_v44  ;;  %v537_v10 = vpack.c.bf16 %v197_v9, %v196_v8  ;;  %v292_v12 = vld [vmem:[#allocation8 + $0x8] sm:$0xff]  ;;  %v293_v13 = vld [vmem:[#allocation8 + $0x10] sm:$0xff]  ;;  %539 = vmatprep.subr.bf16.mxu0 %v702_v14  ;;  %v294_v16 = vld [vmem:[#allocation8 + $0x18] sm:$0xff] }
  0x5c   :  { %520 = vmatprep.subr.bf16.mxu1 %v519_v45  ;;  %v540_v15 = vpack.c.bf16 %v292_v12, %v291_v11  ;;  %v543_v17 = vpack.c.bf16 %v294_v16, %v293_v13  ;;  %v295_v18 = vld [vmem:[#allocation8 + $0x20] sm:$0xff]  ;;  %v296_v19 = vld [vmem:[#allocation8 + $0x28] sm:$0xff]  ;;  %v297_v21 = vld [vmem:[#allocation8 + $0x30] sm:$0xff] }
  0x5d   :  { %401 = vmatmul.mubr.msk.f32.vlgmr.msra.gmra.mrb[0].mxu0 %vm105_vm0, %v77_v48  ;;  %v546_v20 = vpack.c.bf16 %v296_v19, %v295_v18  ;;  %v298_v22 = vld [vmem:[#allocation8 + $0x38] sm:$0xff]  ;;  %v299_v24 = vld [vmem:[#allocation8 + $0x40] sm:$0xff]  ;;  %v300_v25 = vld [vmem:[#allocation8 + $0x48] sm:$0xff] }
  0x5e   :  { %541 = vmatpush3.bf16.msra.mxu0 %v540_v15  ;;  %v549_v23 = vpack.c.bf16 %v298_v22, %v297_v21  ;;  %v552_v26 = vpack.c.bf16 %v300_v25, %v299_v24  ;;  %v301_v27 = vld [vmem:[#allocation8 + $0x50] sm:$0xff]  ;;  %v302_v28 = vld [vmem:[#allocation8 + $0x58] sm:$0xff]  ;;  %v303_v43 = vld [vmem:[#allocation8 + $0x60] sm:$0xff]  ;;  %488 = vmatprep.mubr.msk.f32.mxu0 %vm703_vm1, %v701_v0 }
  0x5f   :  { %522 = vmatpush3.bf16.msra.mxu1 %v521_v51  ;;  %542 = vmatprep.subr.bf16.mxu0 %v702_v14  ;;  %v555_v29 = vpack.c.bf16 %v302_v28, %v301_v27  ;;  %v74_v33 = vld [vmem:[%s810_s4] sm:$0x3]  ;;  %v304_v44 = vld [vmem:[#allocation8 + $0x68] sm:$0xff]  ;;  %v305_v46 = vld [vmem:[#allocation8 + $0x70] sm:$0xff] }
  0x60   :  { %524 = vmatprep.subr.bf16.mxu1 %v523_v52  ;;  %v98_v35 = vrot.slane %v74_v33, %v97_v32  ;;  %v102_v36 = vrot.slane %v74_v33, %v101_v34  ;;  %v558_v45 = vpack.c.bf16 %v304_v44, %v303_v43  ;;  %v306_v47 = vld [vmem:[#allocation8 + $0x78] sm:$0xff] }
  0x61   :  { %v561_v48 = vpack.c.bf16 %v306_v47, %v305_v46  ;;  %v402_v50 = vld [vmem:[%s810_s4 + $0x2] ss:$0 sm:$0xff]  ;;  %v403_v55 = vld [vmem:[%s810_s4 + $0x3] ss:$0 sm:$0xff] }
  0x62   :  { %544 = vmatpush3.bf16.msra.mxu0 %v543_v17 }
  0x63   :  { %526 = vmatpush3.bf16.msra.mxu1 %v525_v57  ;;  %545 = vmatprep.subr.bf16.mxu0 %v702_v14 }
  0x64   :  { %528 = vmatprep.subr.bf16.mxu1 %v527_v58 }
  0x66   :  { %547 = vmatpush3.bf16.msra.mxu0 %v546_v20 }
  0x67   :  { %530 = vmatpush3.bf16.msra.mxu1 %v529_v63  ;;  %548 = vmatprep.subr.bf16.mxu0 %v702_v14 }
  0x68   :  { %532 = vmatprep.subr.bf16.mxu1 %v531_v1 }
  0x6a   :  { %550 = vmatpush3.bf16.msra.mxu0 %v549_v23 }
  0x6b   :  { %534 = vmatpush3.bf16.msra.mxu1 %v533_v4  ;;  %551 = vmatprep.subr.bf16.mxu0 %v702_v14 }
  0x6c   :  { %536 = vmatprep.subr.bf16.mxu1 %v535_v7 }
  0x6e   :  { %553 = vmatpush3.bf16.msra.mxu0 %v552_v26 }
  0x6f   :  { %538 = vmatpush3.bf16.msra.mxu1 %v537_v10  ;;  %554 = vmatprep.subr.bf16.mxu0 %v702_v14 }
  0x72   :  { %556 = vmatpush3.bf16.msra.mxu0 %v555_v29 }
  0x73   :  { %557 = vmatprep.subr.bf16.mxu0 %v702_v14 }
  0x76   :  { %559 = vmatpush3.bf16.msra.mxu0 %v558_v45 }
  0x77   :  { %560 = vmatprep.subr.bf16.mxu0 %v702_v14 }
  0x7a   :  { %562 = vmatpush3.bf16.msra.mxu0 %v561_v48 }
 0x130   :  { %v175_v37 = vpop.f32.mrb[0].mxu0 }
 0x131   :  { %v176_v38 = vadd.f32 %v175_v37, %v98_v35  ;;  %v177_v39 = vpop.f32.mrb[1].mxu0 }
 0x132   :  { %v178_v40 = vadd.f32 %v177_v39, %v102_v36 }
 0x133   :  { %v180_v42 = vmax.f32 %v176_v38, 0.0 }
 0x134   :  { %v181_v41 = vmax.f32 %v178_v40, 0.0 }
 0x136   :  { %284 = vmatprep.mubr.f32.mxu1 %v181_v41 }
 0x137   :  { %285 = vmatmul.mubr.f32.vlgmr.msra.gmra.mrb[0].mxu1 %v180_v42 }
 0x20a   :  { %v436_v49 = vpop.f32.mrb[0].mxu1 }
 0x20b   :  { %v437_v51 = vpop.f32.mrb[1].mxu1 }
 0x20c   :  { %v438_v52 = vadd.f32 %v437_v51, %v436_v49 }
 0x20e   :  { %v287_v53 = vadd.f32 %v438_v52, %v402_v50 }
 0x210   :  { %v290_v54 = vmax.f32 %v287_v53, 0.0 }
 0x212   :  { %489 = vmatmul.mubr.f32.vlgmr.msra.gmra.mrb[2].mxu0 %v290_v54 }
 0x2e5   :  { %v379_v56 = vpop.f32.mrb[2].mxu0 }
 0x2e6   :  { %v380_v57 = vadd.f32 %v403_v55, %v379_v56  ;;  %v490_v58 = vpop.f32.mrb[3].mxu0 }
 0x2e8   :  { %383 = vst [vmem:[#allocation10] sm:$0xff] %v380_v57 }
 0x2e9   :  { %674 = shalt.err (!%p671_p8)
}
 0x2ea   :  { %s675_s26 = scalar_lea.hbm %s811_s5, 128 }
 0x2eb   :  { %p676_p9 = scmp.ne.s32.totalorder %s811_s5, %s675_s26  ;;  %p679_p10 = scmp.lt.u32.totalorder %s675_s26, %s811_s5 }
 0x2ed   :  { %p681_p11 = pnand %p679_p10, %p676_p9 }
 0x2ef   :  { %684 = shalt.err (!%p681_p11)
}
 0x2f0   :  { %393 = dma.vmem_to_hbm [thread:$0]  %s391_s22, 128, %s811_s5, [#allocation4]  }
 0x2f1   :  { %691 = dma.done.wait [#allocation4], 128  }
 0x2f2   :  { %692 = vsyncadd [#allocation4], 4294967168 }
 0x2f3   :  { %397 = vsyncpa [#allocation3], 1 }
 0x2f4   :  { %398 = vsyncpa [#allocation6], 1 }
 0x2f5   :  { %399 = vsyncpa [#allocation9], 1 }
 0x2f6   :  { %400 = vsyncpa [#allocation4], 1 }

</bundles_post_ra>
